<compile_context>
chip_gen: v7x
topology: tpu7x:2x2x1
jax: 0.10.0
libtpu: 0.0.40
codegen_flags: <defaults>
</compile_context>

<pallas_src>
import math
import functools

import jax
import jax.numpy as jnp
from jax.experimental import pallas as pl
from jax.experimental.pallas import tpu as pltpu


def _adapter_kernel(x_ref, wd_ref, bd_ref, wu_ref, bu_ref, o_ref,
                    *, scale, eps, add_residual):
    # x_ref: (tm, D)   wd_ref: (D, Nb)   bd_ref: (1, Nb)
    # wu_ref: (Nb, D)  bu_ref: (1, D)    o_ref:  (tm, D)
    x = x_ref[...].astype(jnp.float32)

    # LayerNorm statistics (adapter_layernorm_option == 'in'); the affine
    # gamma/beta have been folded into wd/bd in the wrapper.
    mu = jnp.mean(x, axis=-1, keepdims=True)
    xc = x - mu
    var = jnp.mean(xc * xc, axis=-1, keepdims=True)
    xn = xc * jax.lax.rsqrt(var + eps)

    # down_proj (+ folded LN affine) + ReLU.  dropout p=0.0 -> no-op.
    down = jnp.dot(xn, wd_ref[...], preferred_element_type=jnp.float32)
    down = jnp.maximum(down + bd_ref[...], 0.0)

    # visual_up_proj + fixed scalar scale.
    up = jnp.dot(down, wu_ref[...], preferred_element_type=jnp.float32)
    up = (up + bu_ref[...]) * scale
    if add_residual:
        up = up + x

    o_ref[...] = up.astype(o_ref.dtype)


def _pick_row_tile(M, block_m):
    """Row tile: biggest 128-multiple <= block_m, with >=2 grid steps when possible."""
    if M < 256:
        return M                      # single full-extent block (always legal)
    tm = min(block_m, (M + 1) // 2)   # at least 2 grid steps -> both TCs on v7x
    return max(128, (tm // 128) * 128)


@functools.partial(jax.jit,
                   static_argnames=("scale", "eps", "add_residual", "block_m"))
def da_adapter_vis_forward(x, params, *, scale=0.1, eps=1e-5,
                           add_residual=False, block_m=2048):
    """x: [B, S, d_model]; params = (gamma, beta, wd_t, bd, wu_t, bu)."""
    gamma, beta, wd_t, bd, wu_t, bu = params
    B, S, D = x.shape
    Nb = wd_t.shape[1]
    M = B * S

    x2 = x.reshape(M, D)              # free reshape; no pad / no copies

    # Fold LayerNorm affine into the down projection (trace-time, tiny).
    hp = jax.lax.Precision.HIGHEST
    g32, be32 = gamma.astype(jnp.float32), beta.astype(jnp.float32)
    wd32 = wd_t.astype(jnp.float32)
    wd_f = g32[:, None] * wd32                                    # (D, Nb)
    bd_f = (bd.astype(jnp.float32)
            + jnp.einsum("d,dn->n", be32, wd32, precision=hp)).reshape(1, Nb)
    wu_f = wu_t.astype(jnp.float32)                               # (Nb, D)
    bu_f = bu.astype(jnp.float32).reshape(1, D)

    tm = _pick_row_tile(M, block_m)
    grid_m = pl.cdiv(M, tm)

    kernel = functools.partial(_adapter_kernel, scale=scale, eps=eps,
                               add_residual=add_residual)

    itemsize = jnp.dtype(x.dtype).itemsize
    cost = pl.CostEstimate(
        flops=4 * M * D * Nb + 8 * M * D,           # two matmuls + LN/elementwise
        transcendentals=M,                           # one rsqrt per row
        bytes_accessed=2 * M * D * itemsize + (2 * D * Nb + Nb + D) * 4,
    )

    out = pl.pallas_call(
        kernel,
        out_shape=jax.ShapeDtypeStruct((M, D), x.dtype),
        grid=(grid_m,),
        in_specs=[
            pl.BlockSpec((tm, D), lambda i: (i, 0)),    # x rows   (streamed)
            pl.BlockSpec((D, Nb), lambda i: (0, 0)),    # folded down W^T (resident)
            pl.BlockSpec((1, Nb), lambda i: (0, 0)),    # folded down bias (resident)
            pl.BlockSpec((Nb, D), lambda i: (0, 0)),    # up W^T   (resident)
            pl.BlockSpec((1, D), lambda i: (0, 0)),     # up bias  (resident)
        ],
        out_specs=pl.BlockSpec((tm, D), lambda i: (i, 0)),
        compiler_params=pltpu.CompilerParams(
            dimension_semantics=("parallel",),
            vmem_limit_bytes=32 * 1024 * 1024,
        ),
        cost_estimate=cost,
    )(x2, wd_f, bd_f, wu_f, bu_f)

    return out.reshape(B, S, D)


def init_params(key, d_model=256, bottleneck=16, dtype=jnp.float32):
    """Match the PyTorch module's init distributions (not bit-exact RNG)."""
    k_wd, k_bd, k_wu, k_bu = jax.random.split(key, 4)
    gamma = jnp.ones((d_model,), dtype)               # LayerNorm defaults
    beta = jnp.zeros((d_model,), dtype)
    # kaiming_uniform_(a=sqrt(5)) -> U(-1/sqrt(fan_in), 1/sqrt(fan_in)); bias U(0,1).
    bound_d = 1.0 / math.sqrt(d_model)
    wd = jax.random.uniform(k_wd, (bottleneck, d_model), dtype, -bound_d, bound_d)
    bd = jax.random.uniform(k_bd, (bottleneck,), dtype, 0.0, 1.0)
    bound_u = 1.0 / math.sqrt(bottleneck)
    wu = jax.random.uniform(k_wu, (d_model, bottleneck), dtype, -bound_u, bound_u)
    bu = jax.random.uniform(k_bu, (d_model,), dtype, 0.0, 1.0)
    # Store weights pre-transposed for the kernel: [in, out].
    return gamma, beta, wd.T, bd, wu.T, bu


def _reference(x, params, scale=0.1, eps=1e-5, add_residual=False):
    """Pure-JAX f32 reference (HIGHEST-precision matmuls)."""
    gamma, beta, wd_t, bd, wu_t, bu = params
    hp = jax.lax.Precision.HIGHEST
    xf = x.astype(jnp.float32)
    mu = xf.mean(-1, keepdims=True)
    var = ((xf - mu) ** 2).mean(-1, keepdims=True)
    xn = (xf - mu) * jax.lax.rsqrt(var + eps) * gamma + beta
    down = jnp.maximum(jnp.einsum("...d,dn->...n", xn, wd_t, precision=hp) + bd, 0.0)
    up = jnp.einsum("...n,nd->...d", down, wu_t, precision=hp) + bu
    up = up * scale
    if add_residual:
        up = up + xf
    return up


# TODO(synk): dropout with p>0 (training-mode RNG), 'out' layernorm placement and
# the learnable adapter scalar are not implemented (not on the default forward path).


if __name__ == "__main__":
    key = jax.random.PRNGKey(0)
    k_x1, k_x2, k_p = jax.random.split(key, 3)

    d_model, bottleneck = 256, 16
    params = init_params(k_p, d_model, bottleneck)

    # Test 1: tiny shape -> single full-extent block.
    x_small = jax.random.normal(k_x1, (2, 8, d_model), jnp.float32)
    out_small = jax.block_until_ready(da_adapter_vis_forward(x_small, params))
    ref_small = _reference(x_small, params)
    assert out_small.shape == x_small.shape
    assert jnp.allclose(out_small, ref_small, atol=5e-3, rtol=5e-3)

    # Test 2: tiled grid with a ragged last block + residual add.
    x_big = jax.random.normal(k_x2, (2, 333, d_model), jnp.float32)
    out_big = jax.block_until_ready(
        da_adapter_vis_forward(x_big, params, add_residual=True))
    ref_big = _reference(x_big, params, add_residual=True)
    assert jnp.allclose(out_big, ref_big, atol=5e-3, rtol=5e-3)

    # Test 3: bf16 activations in HBM (bandwidth-bound fast path, f32 compute).
    x_bf = x_big.astype(jnp.bfloat16)
    out_bf = jax.block_until_ready(da_adapter_vis_forward(x_bf, params))
    assert out_bf.dtype == jnp.bfloat16
    ref_bf = _reference(x_bf.astype(jnp.float32), params)
    assert jnp.allclose(out_bf.astype(jnp.float32), ref_bf, atol=2e-2, rtol=2e-2)

    print("KERNEL_OK")
</pallas_src>

<mosaic_0001>
module attributes {stable_mosaic.version = 11 : i64} {
  func.func @_adapter_kernel(%arg0: i32, %arg1: memref<16x256xf32, #tpu.memory_space<vmem>>, %arg2: memref<256x16xf32, #tpu.memory_space<vmem>>, %arg3: memref<1x16xf32, #tpu.memory_space<vmem>>, %arg4: memref<16x256xf32, #tpu.memory_space<vmem>>, %arg5: memref<1x256xf32, #tpu.memory_space<vmem>>, %arg6: memref<16x256xf32, #tpu.memory_space<vmem>>) attributes {dimension_semantics = [#tpu.dimension_semantics<parallel>], iteration_bounds = array<i64: 1>, scalar_prefetch = 0 : i64, scratch_operands = 0 : i64, tpu.core_type = #tpu.core_type<tc>, window_params = [{transform_indices = @transform_0, window_bounds = array<i64: 16, 256>}, {pipeline_mode = #tpu.pipeline_mode<synchronous>, transform_indices = @transform_1, window_bounds = array<i64: 256, 16>}, {pipeline_mode = #tpu.pipeline_mode<synchronous>, transform_indices = @transform_2, window_bounds = array<i64: 1, 16>}, {pipeline_mode = #tpu.pipeline_mode<synchronous>, transform_indices = @transform_3, window_bounds = array<i64: 16, 256>}, {pipeline_mode = #tpu.pipeline_mode<synchronous>, transform_indices = @transform_4, window_bounds = array<i64: 1, 256>}, {transform_indices = @transform_5, window_bounds = array<i64: 16, 256>}]} {
    %c0 = arith.constant 0 : index
    %c0_0 = arith.constant 0 : index
    %0 = vector.load %arg1[%c0, %c0_0] : memref<16x256xf32, #tpu.memory_space<vmem>>, vector<16x256xf32>
    %cst = arith.constant dense<0.000000e+00> : vector<16xf32>
    %1 = vector.multi_reduction <add>, %0, %cst [1] : vector<16x256xf32> to vector<16xf32>
    %2 = vector.shape_cast %1 : vector<16xf32> to vector<16x1xf32>
    %cst_1 = arith.constant 2.560000e+02 : f32
    %3 = vector.broadcast %cst_1 : f32 to vector<16x1xf32>
    %4 = arith.divf %2, %3 : vector<16x1xf32>
    %5 = vector.broadcast %4 : vector<16x1xf32> to vector<16x256xf32>
    %6 = arith.subf %0, %5 : vector<16x256xf32>
    %7 = arith.mulf %6, %6 : vector<16x256xf32>
    %cst_2 = arith.constant dense<0.000000e+00> : vector<16xf32>
    %8 = vector.multi_reduction <add>, %7, %cst_2 [1] : vector<16x256xf32> to vector<16xf32>
    %9 = vector.shape_cast %8 : vector<16xf32> to vector<16x1xf32>
    %cst_3 = arith.constant 2.560000e+02 : f32
    %10 = vector.broadcast %cst_3 : f32 to vector<16x1xf32>
    %11 = arith.divf %9, %10 : vector<16x1xf32>
    %cst_4 = arith.constant 9.99999974E-6 : f32
    %12 = vector.broadcast %cst_4 : f32 to vector<16x1xf32>
    %13 = arith.addf %11, %12 : vector<16x1xf32>
    %14 = math.rsqrt %13 : vector<16x1xf32>
    %15 = vector.broadcast %14 : vector<16x1xf32> to vector<16x256xf32>
    %16 = arith.mulf %6, %15 : vector<16x256xf32>
    %c0_5 = arith.constant 0 : index
    %c0_6 = arith.constant 0 : index
    %17 = vector.load %arg2[%c0_5, %c0_6] : memref<256x16xf32, #tpu.memory_space<vmem>>, vector<256x16xf32>
    %cst_7 = arith.constant dense<0.000000e+00> : vector<16x16xf32>
    %18 = tpu.matmul %16, %17, %cst_7 {dimension_numbers = #tpu.dot_dimension_numbers<[1], [0], [0], [1], [0, 0, 1, 1], [], []>} : vector<16x256xf32>, vector<256x16xf32>, vector<16x16xf32> -> vector<16x16xf32>
    %c0_8 = arith.constant 0 : index
    %c0_9 = arith.constant 0 : index
    %19 = vector.load %arg3[%c0_8, %c0_9] : memref<1x16xf32, #tpu.memory_space<vmem>>, vector<1x16xf32>
    %20 = vector.broadcast %19 : vector<1x16xf32> to vector<16x16xf32>
    %21 = arith.addf %18, %20 : vector<16x16xf32>
    %cst_10 = arith.constant 0.000000e+00 : f32
    %22 = vector.broadcast %cst_10 : f32 to vector<16x16xf32>
    %23 = arith.maximumf %21, %22 : vector<16x16xf32>
    %c0_11 = arith.constant 0 : index
    %c0_12 = arith.constant 0 : index
    %24 = vector.load %arg4[%c0_11, %c0_12] : memref<16x256xf32, #tpu.memory_space<vmem>>, vector<16x256xf32>
    %cst_13 = arith.constant dense<0.000000e+00> : vector<16x256xf32>
    %25 = tpu.matmul %23, %24, %cst_13 {dimension_numbers = #tpu.dot_dimension_numbers<[1], [0], [0], [1], [0, 0, 1, 1], [], []>} : vector<16x16xf32>, vector<16x256xf32>, vector<16x256xf32> -> vector<16x256xf32>
    %c0_14 = arith.constant 0 : index
    %c0_15 = arith.constant 0 : index
    %26 = vector.load %arg5[%c0_14, %c0_15] : memref<1x256xf32, #tpu.memory_space<vmem>>, vector<1x256xf32>
    %27 = vector.broadcast %26 : vector<1x256xf32> to vector<16x256xf32>
    %28 = arith.addf %25, %27 : vector<16x256xf32>
    %cst_16 = arith.constant 1.000000e-01 : f32
    %29 = vector.broadcast %cst_16 : f32 to vector<16x256xf32>
    %30 = arith.mulf %28, %29 : vector<16x256xf32>
    %c0_17 = arith.constant 0 : index
    %c0_18 = arith.constant 0 : index
    %31 = vector.load %arg6[%c0_17, %c0_18] : memref<16x256xf32, #tpu.memory_space<vmem>>, vector<16x256xf32>
    tpu.vector_store %arg6[%c0_17, %c0_18], %30 {strides = array<i32>} : memref<16x256xf32, #tpu.memory_space<vmem>>, vector<16x256xf32>,
    return
  }
  func.func @transform_0(%arg0: i32) -> (i32, i32) {
    %c0_i32 = arith.constant 0 : i32
    %c0_i32_0 = arith.constant 0 : i32
    return %arg0, %c0_i32 : i32, i32
  }
  func.func @transform_1(%arg0: i32) -> (i32, i32) {
    %c0_i32 = arith.constant 0 : i32
    %c0_i32_0 = arith.constant 0 : i32
    %c0_i32_1 = arith.constant 0 : i32
    return %c0_i32, %c0_i32_0 : i32, i32
  }
  func.func @transform_2(%arg0: i32) -> (i32, i32) {
    %c0_i32 = arith.constant 0 : i32
    %c0_i32_0 = arith.constant 0 : i32
    %c0_i32_1 = arith.constant 0 : i32
    return %c0_i32, %c0_i32_0 : i32, i32
  }
  func.func @transform_3(%arg0: i32) -> (i32, i32) {
    %c0_i32 = arith.constant 0 : i32
    %c0_i32_0 = arith.constant 0 : i32
    %c0_i32_1 = arith.constant 0 : i32
    return %c0_i32, %c0_i32_0 : i32, i32
  }
  func.func @transform_4(%arg0: i32) -> (i32, i32) {
    %c0_i32 = arith.constant 0 : i32
    %c0_i32_0 = arith.constant 0 : i32
    %c0_i32_1 = arith.constant 0 : i32
    return %c0_i32, %c0_i32_0 : i32, i32
  }
  func.func @transform_5(%arg0: i32) -> (i32, i32) {
    %c0_i32 = arith.constant 0 : i32
    %c0_i32_0 = arith.constant 0 : i32
    return %arg0, %c0_i32 : i32, i32
  }
}

</mosaic_0001>

<bundles_post_ra>
// kernel: da_adapter_vis_forward.1
= control target key start
LH: loop header
LB: loop body
LE: loop exit
PB: predicated region body
PF: predicated region fallthrough
CT: control target
= control target key end

     0   :  { %s579_s0 = inlined_call_operand.vmem [shape: f32[16,256], index: 0, kind: input, shape index: {}]   ;;  %s580_s1 = inlined_call_operand.vmem [shape: f32[256,16], index: 1, kind: input, shape index: {}]   ;;  %s581_s2 = inlined_call_operand.vmem [shape: f32[1,16], index: 2, kind: input, shape index: {}]   ;;  %s582_s3 = inlined_call_operand.vmem [shape: f32[16,256], index: 3, kind: input, shape index: {}]   ;;  %s583_s4 = inlined_call_operand.vmem [shape: f32[1,256], index: 4, kind: input, shape index: {}]   ;;  %s584_s5 = inlined_call_operand.hbm [shape: f32[16,256], index: 5, kind: output, shape index: {}]  }
   0x1   :  { %v21_v0 = vld [vmem:[%s579_s0] sm:$0xff]  ;;  %v22_v1 = vld [vmem:[%s579_s0 + $0x8] sm:$0xff]  ;;  %v23_v2 = vld [vmem:[%s579_s0 + $0x10] sm:$0xff] }
   0x2   :  { %v25_v3 = vadd.f32 %v22_v1, %v21_v0  ;;  %v24_v4 = vld [vmem:[%s579_s0 + $0x18] sm:$0xff] }
   0x3   :  { %10 = vsyncpa [#allocation3], 0  ;;  %v28_v5 = vadd.f32 %v24_v4, %v23_v2  ;;  %v74_v6 = vld [vmem:[%s580_s1 + $0x80] sm:$0xff]  ;;  %v75_v7 = vld [vmem:[%s580_s1 + $0x88] sm:$0xff]  ;;  %vm190_vm0 = vcmask 130048  }
   0x4   :  { %26 = vadd.xlane.f32.xlu0 %v25_v3  ;;  %v58_v8 = vld [vmem:[%s580_s1] sm:$0xff]  ;;  %v339_v9 = vpack.c.bf16 %v75_v7, %v74_v6  ;;  %v59_v10 = vld [vmem:[%s580_s1 + $0x8] sm:$0xff]  ;;  %v76_v11 = vld [vmem:[%s580_s1 + $0x90] sm:$0xff] }
   0x5   :  { %v77_v12 = vld [vmem:[%s580_s1 + $0x98] sm:$0xff]  ;;  %v341_v13 = vpack.c.bf16 %v59_v10, %v58_v8  ;;  %v60_v15 = vld [vmem:[%s580_s1 + $0x10] sm:$0xff]  ;;  %v78_v17 = vld [vmem:[%s580_s1 + $0xa0] sm:$0xff] }
   0x6   :  { %v343_v14 = vpack.c.bf16 %v77_v12, %v76_v11  ;;  %v61_v16 = vld [vmem:[%s580_s1 + $0x18] sm:$0xff]  ;;  %340 = vmatprep.subr.bf16.mxu0 %v339_v9  ;;  %v79_v18 = vld [vmem:[%s580_s1 + $0xa8] sm:$0xff]  ;;  %v62_v21 = vld [vmem:[%s580_s1 + $0x20] sm:$0xff] }
   0x7   :  { %342 = vmatpush3.bf16.msra.mxu0 %v341_v13  ;;  %v345_v19 = vpack.c.bf16 %v61_v16, %v60_v15  ;;  %v347_v20 = vpack.c.bf16 %v79_v18, %v78_v17  ;;  %v63_v22 = vld [vmem:[%s580_s1 + $0x28] sm:$0xff]  ;;  %v80_v23 = vld [vmem:[%s580_s1 + $0xb0] sm:$0xff]  ;;  %v81_v24 = vld [vmem:[%s580_s1 + $0xb8] sm:$0xff] }
   0x8   :  { %29 = vadd.xlane.f32.xlu0 %v28_v5  ;;  %344 = vmatprep.subr.bf16.mxu0 %v343_v14  ;;  %v349_v25 = vpack.c.bf16 %v63_v22, %v62_v21  ;;  %v351_v26 = vpack.c.bf16 %v81_v24, %v80_v23  ;;  %v64_v27 = vld [vmem:[%s580_s1 + $0x30] sm:$0xff]  ;;  %v65_v28 = vld [vmem:[%s580_s1 + $0x38] sm:$0xff]  ;;  %v82_v44 = vld [vmem:[%s580_s1 + $0xc0] sm:$0xff]  ;;  %v407_v22 = vmov 0.0  }
   0x9   :  { %v353_v29 = vpack.c.bf16 %v65_v28, %v64_v27  ;;  %v83_v45 = vld [vmem:[%s580_s1 + $0xc8] sm:$0xff]  ;;  %v66_v47 = vld [vmem:[%s580_s1 + $0x40] sm:$0xff]  ;;  %v84_v50 = vld [vmem:[%s580_s1 + $0xd0] sm:$0xff]  ;;  %261 = vmatprep.mubr.f32.mxu1 %v407_v22 }
   0xa   :  { %v355_v46 = vpack.c.bf16 %v83_v45, %v82_v44  ;;  %v67_v48 = vld [vmem:[%s580_s1 + $0x48] sm:$0xff]  ;;  %v85_v51 = vld [vmem:[%s580_s1 + $0xd8] sm:$0xff]  ;;  %v68_v53 = vld [vmem:[%s580_s1 + $0x50] sm:$0xff] }
   0xb   :  { %346 = vmatpush3.bf16.msra.mxu0 %v345_v19  ;;  %v357_v49 = vpack.c.bf16 %v67_v48, %v66_v47  ;;  %v359_v52 = vpack.c.bf16 %v85_v51, %v84_v50  ;;  %v69_v54 = vld [vmem:[%s580_s1 + $0x58] sm:$0xff]  ;;  %v86_v56 = vld [vmem:[%s580_s1 + $0xe0] sm:$0xff]  ;;  %v87_v57 = vld [vmem:[%s580_s1 + $0xe8] sm:$0xff] }
   0xc   :  { %348 = vmatprep.subr.bf16.mxu0 %v347_v20  ;;  %v361_v55 = vpack.c.bf16 %v69_v54, %v68_v53  ;;  %v363_v58 = vpack.c.bf16 %v87_v57, %v86_v56  ;;  %v70_v59 = vld [vmem:[%s580_s1 + $0x60] sm:$0xff]  ;;  %v71_v60 = vld [vmem:[%s580_s1 + $0x68] sm:$0xff]  ;;  %v88_v61 = vld [vmem:[%s580_s1 + $0xf0] sm:$0xff] }
   0xd   :  { %v365_v62 = vpack.c.bf16 %v71_v60, %v70_v59  ;;  %v89_v63 = vld [vmem:[%s580_s1 + $0xf8] sm:$0xff]  ;;  %v175_v16 = vld [vmem:[%s582_s3 + $0x8] sm:$0xff]  ;;  %v174_v19 = vld [vmem:[%s582_s3] sm:$0xff] }
   0xe   :  { %v177_v17 = vld [vmem:[%s582_s3 + $0x18] sm:$0xff]  ;;  %v176_v20 = vld [vmem:[%s582_s3 + $0x10] sm:$0xff]  ;;  %v298_v24 = vld [vmem:[%s581_s2] ss:$0 sm:$0xff]  ;;  %s408_s2 = smov [#allocation2]  }
   0xf   :  { %350 = vmatpush3.bf16.msra.mxu0 %v349_v25  ;;  %v371_v18 = vpack.c.bf16 %v177_v17, %v175_v16  ;;  %v373_v21 = vpack.c.bf16 %v176_v20, %v174_v19  ;;  %s287_s22 = sshll.u32 %s408_s2, 4  ;;  %s288_s22 = int_to_ptr.vmem [resolvable:$true] %s287_s22 }
  0x10   :  { %352 = vmatprep.subr.bf16.mxu0 %v351_v26  ;;  %p388_p1 = scmp.lt.s32.totalorder %s288_s22, %s288_s22 }
  0x11   :  { %372 = vmatprep.subr.bf16.mxu1 %v371_v18 }
  0x12   :  { %374 = vmatpush1.bf16.msra.mxu1 %v373_v21 }
  0x13   :  { %354 = vmatpush3.bf16.msra.mxu0 %v353_v29 }
  0x14   :  { %356 = vmatprep.subr.bf16.mxu0 %v355_v46 }
  0x17   :  { %358 = vmatpush3.bf16.msra.mxu0 %v357_v49 }
  0x18   :  { %360 = vmatprep.subr.bf16.mxu0 %v359_v52 }
  0x1b   :  { %362 = vmatpush3.bf16.msra.mxu0 %v361_v55 }
  0x1c   :  { %364 = vmatprep.subr.bf16.mxu0 %v363_v58 }
  0x1f   :  { %366 = vmatpush3.bf16.msra.mxu0 %v365_v62 }
  0x91   :  { %v27_v30 = vpop.xlane.xlu0 %26 }
  0x92   :  { %v32_v31 = vmul.f32 0.00390625, %v27_v30 }
  0x94   :  { %v34_v32 = vsub.f32 %v21_v0, %v32_v31  ;;  %v35_v33 = vsub.f32 %v22_v1, %v32_v31  ;;  %v72_v0 = vld [vmem:[%s580_s1 + $0x70] sm:$0xff]  ;;  %v73_v1 = vld [vmem:[%s580_s1 + $0x78] sm:$0xff] }
  0x95   :  { %v30_v34 = vpop.xlane.xlu0 %29  ;;  %v369_v3 = vpack.c.bf16 %v73_v1, %v72_v0 }
  0x96   :  { %v33_v35 = vmul.f32 0.00390625, %v30_v34  ;;  %v38_v36 = vmul.f32 %v34_v32, %v34_v32  ;;  %v39_v37 = vmul.f32 %v35_v33, %v35_v33  ;;  %v180_v34 = vlaneseq }
  0x98   :  { %v36_v38 = vsub.f32 %v23_v2, %v33_v35  ;;  %v37_v39 = vsub.f32 %v24_v4, %v33_v35  ;;  %v42_v40 = vadd.f32 %v39_v37, %v38_v36  ;;  %v367_v2 = vpack.c.bf16 %v89_v63, %v88_v61  ;;  %v178_v37 = vld [vmem:[%s583_s4] sm:$0x3]  ;;  %s383_s4 = scalar_lea.vmem %s288_s22, 512 }
  0x99   :  { %v181_v35 = vshrl.u32 %v180_v34, 7  ;;  %p384_p0 = scmp.ne.s32.totalorder %s288_s22, %s383_s4  ;;  %p389_p2 = scmp.lt.s32.totalorder %s383_s4, %s383_s4 }
  0x9a   :  { %43 = vadd.xlane.f32.xlu1 %v42_v40  ;;  %v40_v41 = vmul.f32 %v36_v38, %v36_v38  ;;  %v41_v42 = vmul.f32 %v37_v39, %v37_v39  ;;  %368 = vmatprep.subr.bf16.mxu0 %v367_v2 }
  0x9b   :  { %370 = vmatpush3.bf16.msra.mxu0 %v369_v3  ;;  %v182_v36 = vsub.s32 0, %v181_v35  ;;  %p390_p3 = por %p389_p2, %p388_p1 }
  0x9c   :  { %v45_v43 = vadd.f32 %v41_v42, %v40_v41 }
  0x9d   :  { %p391_p4 = pnand %p390_p3, %p384_p0 }
  0x9e   :  { %46 = vadd.xlane.f32.xlu1 %v45_v43 }
 0x127   :  { %v44_v4 = vpop.xlane.xlu1 %43 }
 0x128   :  { %v48_v5 = vmul.f32 0.00390625, %v44_v4 }
 0x12a   :  { %v50_v6 = vadd.f32 1e-05, %v48_v5 }
 0x12b   :  { %v47_v7 = vpop.xlane.xlu1 %46 }
 0x12c   :  { %379 = vrsqrt.f32 %v50_v6  ;;  %v49_v8 = vmul.f32 0.00390625, %v47_v7 }
 0x12e   :  { %v51_v9 = vadd.f32 1e-05, %v49_v8 }
 0x130   :  { %381 = vrsqrt.f32 %v51_v9 }
 0x136   :  { %v380_v10 = vpop.eup %379 }
 0x137   :  { %v55_v11 = vmul.f32 %v380_v10, %v35_v33  ;;  %v54_v12 = vmul.f32 %v380_v10, %v34_v32 }
 0x139   :  { %161 = vmatprep.mubr.f32.mxu0 %v55_v11 }
 0x13a   :  { %v382_v13 = vpop.eup %381  ;;  %162 = vmatmul.mubr.f32.vlgmr.msra.gmra.mrb[0].mxu0 %v54_v12 }
 0x13b   :  { %v57_v14 = vmul.f32 %v382_v13, %v37_v39  ;;  %v56_v15 = vmul.f32 %v382_v13, %v36_v38  ;;  %v186_v38 = vsub.s32 1, %v181_v35  ;;  %v183_v39 = vrot.slane %v178_v37, %v182_v36 }
 0x13d   :  { %166 = vmatprep.mubr.f32.mxu0 %v57_v14  ;;  %v187_v40 = vrot.slane %v178_v37, %v186_v38 }
 0x13e   :  { %167 = vmatmul.mubr.f32.gmra.mrb[2].mxu0 %v56_v15 }
 0x20d   :  { %v333_v23 = vpop.f32.mrb[0].mxu0 }
 0x20e   :  { %v334_v25 = vpop.f32.mrb[1].mxu0 }
 0x20f   :  { %v335_v26 = vadd.f32 %v334_v25, %v333_v23 }
 0x211   :  { %v164_v27 = vadd.f32 %v335_v26, %v298_v24  ;;  %v336_v28 = vpop.f32.mrb[2].mxu0 }
 0x212   :  { %v337_v29 = vpop.f32.mrb[3].mxu0 }
 0x213   :  { %v172_v30 = vmax.f32 %v164_v27, 0.0  ;;  %v338_v31 = vadd.f32 %v337_v29, %v336_v28 }
 0x215   :  { %v169_v32 = vadd.f32 %v338_v31, %v298_v24  ;;  %299 = vmatmul.mubr.msk.f32.vlgmr.msra.gmra.mrb[0].mxu1 %vm190_vm0, %v172_v30 }
 0x216   :  { %267 = vmatprep.mubr.f32.mxu1 %v407_v22 }
 0x217   :  { %v173_v33 = vmax.f32 %v169_v32, 0.0 }
 0x219   :  { %300 = vmatmul.mubr.msk.f32.gmra.mrb[2].mxu1 %vm190_vm0, %v173_v33 }
 0x2e8   :  { %v263_v41 = vpop.f32.mrb[0].mxu1 }
 0x2e9   :  { %v264_v42 = vadd.f32 %v263_v41, %v183_v39  ;;  %v265_v43 = vpop.f32.mrb[1].mxu1 }
 0x2ea   :  { %v266_v44 = vadd.f32 %v265_v43, %v187_v40 }
 0x2eb   :  { %v274_v45 = vmul.f32 0.1, %v264_v42 }
 0x2ec   :  { %v275_v46 = vmul.f32 0.1, %v266_v44  ;;  %v269_v47 = vpop.f32.mrb[2].mxu1 }
 0x2ed   :  { %278 = vst [vmem:[#allocation2] sm:$0xff] %v274_v45  ;;  %v270_v48 = vadd.f32 %v269_v47, %v183_v39  ;;  %v271_v49 = vpop.f32.mrb[3].mxu1 }
 0x2ee   :  { %279 = vst [vmem:[#allocation2 + $0x8] sm:$0xff] %v275_v46  ;;  %v272_v50 = vadd.f32 %v271_v49, %v187_v40 }
 0x2ef   :  { %v276_v51 = vmul.f32 0.1, %v270_v48 }
 0x2f0   :  { %v277_v52 = vmul.f32 0.1, %v272_v50 }
 0x2f1   :  { %280 = vst [vmem:[#allocation2 + $0x10] sm:$0xff] %v276_v51 }
 0x2f2   :  { %281 = vst [vmem:[#allocation2 + $0x18] sm:$0xff] %v277_v52 }
 0x2f3   :  { %394 = shalt.err (!%p391_p4)
}
 0x2f4   :  { %s395_s25 = scalar_lea.hbm %s584_s5, 512 }
 0x2f5   :  { %p396_p5 = scmp.ne.s32.totalorder %s584_s5, %s395_s25  ;;  %p399_p6 = scmp.lt.u32.totalorder %s395_s25, %s584_s5 }
 0x2f7   :  { %p401_p7 = pnand %p399_p6, %p396_p5 }
 0x2f9   :  { %404 = shalt.err (!%p401_p7)
}
 0x2fa   :  { %s409_s30 = smov 256   ;;  %s410_s6 = smov 16  }
 0x2fb   :  { %293 = dma.vmem_to_hbm [thread:$0]  %s288_s22, 512, %s584_s5, [#allocation3], %s409_s30, %s409_s30, %s410_s6  }
 0x2fc   :  { %405 = dma.done.wait [#allocation3], 512  }
 0x2fd   :  { %406 = vsyncadd [#allocation3], 4294966784 }
 0x2fe   :  { %297 = vsyncpa [#allocation3], 1 }

</bundles_post_ra>
